<compile_context>
chip_gen: v5e
topology: v5e:2x2
jax: 0.10.0
libtpu: 0.0.40
codegen_flags: <defaults>
</compile_context>

<pallas_src>
import jax
import jax.numpy as jnp
import numpy as np
from jax.experimental import pallas as pl
from jax.experimental.pallas import tpu as pltpu


def potential_kernel(x_ref,
                     w0_ref, b0_ref,
                     w1_ref, b1_ref,
                     w2_ref, b2_ref,
                     w3_ref, b3_ref,
                     w4_ref, b4_ref,
                     o_ref):
    """One batch tile: x_ref [3, TM] -> o_ref [1, TM]. Weights are VMEM-resident."""
    bf16 = jnp.bfloat16
    x = x_ref[...]                                   # [3, TM] f32

    # hidden0: Linear(3, 32) + ReLU  -- VPU broadcast FMAs (K=3, skip the MXU).
    w0 = w0_ref[...]                                 # [32, 3] f32
    w0c0 = w0[:, 0:1]                                # lane-broadcasts, once per tile
    w0c1 = w0[:, 1:2]
    w0c2 = w0[:, 2:3]
    h = (w0c0 * x[0:1, :]
         + w0c1 * x[1:2, :]
         + w0c2 * x[2:3, :]
         + b0_ref[...])                              # [32, TM] f32
    h = jnp.maximum(h, 0.0).astype(bf16)             # carry bf16 (same numerics)

    # hidden1: Linear(32, 32) + ReLU  -- MXU, bf16 operands, f32 accumulation.
    h = jnp.dot(w1_ref[...], h,
                preferred_element_type=jnp.float32) + b1_ref[...]
    h = jnp.maximum(h, 0.0).astype(bf16)             # [32, TM] bf16

    # hidden2: Linear(32, 128) + ReLU  -- residual add below needs f32.
    h2 = jnp.dot(w2_ref[...], h,
                 preferred_element_type=jnp.float32) + b2_ref[...]
    h2 = jnp.maximum(h2, 0.0)                        # [128, TM] f32

    # hidden3 residual: h + ReLU(Linear(128, 128)(h)).
    h3 = jnp.dot(w3_ref[...], h2.astype(bf16),
                 preferred_element_type=jnp.float32) + b3_ref[...]
    h = h2 + jnp.maximum(h3, 0.0)                    # [128, TM] f32

    # out: Linear(128, 1) as VPU multiply + XLU sublane reduction (keeps the
    # MXU free; w4 is passed as a [128, 1] f32 column, b4 as [1, 1]).
    y = jnp.sum(h * w4_ref[...], axis=0, keepdims=True) + b4_ref[...]   # [1, TM]
    o_ref[...] = y.astype(o_ref.dtype)


def potential_forward(x, params, *, tm_max=2048):
    """x: [N, 3] f32.  params: (w0,b0,...,w4,b4) with w [out,in] f32, b [out] f32."""
    n = x.shape[0]
    w0, b0, w1, b1, w2, b2, w3, b3, w4, b4 = params

    # Batch tile on lanes: TM is a multiple of 128; pad N up to grid * TM.
    tm_max = max(128, (int(tm_max) // 128) * 128)
    n128 = pl.cdiv(n, 128) * 128
    tm = min(tm_max, n128)
    if n128 >= 2 * 128:
        # Keep >= 2 grid steps so ("parallel",) can shard the batch across the
        # 2 TensorCores of a v7x chip (no effect on single-TC v5e/v6e).
        tm = min(tm, max(128, (n128 // 2) // 128 * 128))
    n_pad = pl.cdiv(n, tm) * tm
    grid = (n_pad // tm,)

    # Layout plumbing (outside the kernel): batch on lanes, zero-pad tail.
    # allow_input_fusion below lets XLA fuse this producer into the call.
    x_t = jnp.zeros((3, n_pad), jnp.float32).at[:, :n].set(x.T)

    bf16 = jnp.bfloat16
    col = lambda b: b.reshape(-1, 1).astype(jnp.float32)   # bias as [out, 1]
    args = (x_t,
            w0.astype(jnp.float32), col(b0),               # layer 0 stays f32 (VPU)
            w1.astype(bf16), col(b1),
            w2.astype(bf16), col(b2),
            w3.astype(bf16), col(b3),
            w4.astype(jnp.float32).T, col(b4))              # head weight as [128,1] f32

    def resident(a):
        # Constant index_map: block is DMA'd once and stays VMEM-resident
        # (Pallas skips the re-fetch when the block index does not change).
        return pl.BlockSpec(a.shape, lambda i: (0, 0))

    in_specs = ([pl.BlockSpec((3, tm), lambda i: (0, i))] +
                [resident(a) for a in args[1:]])
    out_specs = pl.BlockSpec((1, tm), lambda i: (0, i))

    flops = 2 * n_pad * (3 * 32 + 32 * 32 + 32 * 128 + 128 * 128 + 128 * 1)
    param_bytes = int(sum(int(a.size) * a.dtype.itemsize for a in args[1:]))
    bytes_accessed = 4 * 3 * n_pad + 4 * 1 * n_pad + param_bytes

    y_t = pl.pallas_call(
        potential_kernel,
        out_shape=jax.ShapeDtypeStruct((1, n_pad), jnp.float32),
        grid=grid,
        in_specs=in_specs,
        out_specs=out_specs,
        compiler_params=pltpu.CompilerParams(
            dimension_semantics=("parallel",),
            vmem_limit_bytes=32 * 1024 * 1024,
            allow_input_fusion=[True] + [False] * (len(args) - 1)),
        cost_estimate=pl.CostEstimate(flops=flops, transcendentals=0,
                                      bytes_accessed=bytes_accessed),
    )(*args)

    return y_t[0, :n].reshape(n, 1)


def make_params(key):
    """Deterministic params matching PyTorch Linear shapes: w [out,in], b [out]."""
    dims = [(3, 32), (32, 32), (32, 128), (128, 128), (128, 1)]
    params = []
    for i, (din, dout) in enumerate(dims):
        kw, kb = jax.random.split(jax.random.fold_in(key, i))
        bound = 1.0 / np.sqrt(din)  # PyTorch default Linear init range
        w = jax.random.uniform(kw, (dout, din), jnp.float32, -bound, bound)
        b = jax.random.uniform(kb, (dout,), jnp.float32, -bound, bound)
        params.extend([w, b])
    return tuple(params)


def potential_reference(x, params):
    """Pure-JAX reference with the same numerics as the kernel
    (bf16 operands on the MXU layers, f32 layer 0 and f32 head)."""
    w0, b0, w1, b1, w2, b2, w3, b3, w4, b4 = params
    bf16 = jnp.bfloat16

    def lin_bf16(h, w, b):
        return (jnp.dot(h.astype(bf16), w.astype(bf16).T,
                        preferred_element_type=jnp.float32) + b.reshape(1, -1))

    h = jnp.maximum(x @ w0.T + b0.reshape(1, -1), 0.0)       # layer 0 in f32
    h = jnp.maximum(lin_bf16(h, w1, b1), 0.0)
    h = jnp.maximum(lin_bf16(h, w2, b2), 0.0)
    h = h + jnp.maximum(lin_bf16(h, w3, b3), 0.0)
    return h @ w4.T + b4.reshape(1, -1)                      # f32 head (matches kernel)


if __name__ == "__main__":
    key = jax.random.PRNGKey(0)
    kx, kp = jax.random.split(key)
    params = make_params(kp)

    # Small shape consistent with the module: a batch of 3-D coordinates.
    N = 8
    x = jax.random.normal(kx, (N, 3), jnp.float32)
    out = jax.block_until_ready(potential_forward(x, params))
    assert out.shape == (N, 1), out.shape
    ref = potential_reference(x, params)
    np.testing.assert_allclose(np.asarray(out), np.asarray(ref), rtol=1e-2, atol=1e-2)

    # Multi-tile path (grid > 1, padded tail, TM clamp) sanity check.
    N2 = 640
    x2 = jax.random.normal(jax.random.fold_in(kx, 1), (N2, 3), jnp.float32)
    out2 = jax.block_until_ready(potential_forward(x2, params))
    assert out2.shape == (N2, 1), out2.shape
    ref2 = potential_reference(x2, params)
    np.testing.assert_allclose(np.asarray(out2), np.asarray(ref2), rtol=1e-2, atol=1e-2)

    # Larger batch exercising the big-tile path (TM well above 128).
    N3 = 3000
    x3 = jax.random.normal(jax.random.fold_in(kx, 2), (N3, 3), jnp.float32)
    out3 = jax.block_until_ready(potential_forward(x3, params))
    assert out3.shape == (N3, 1), out3.shape
    ref3 = potential_reference(x3, params)
    np.testing.assert_allclose(np.asarray(out3), np.asarray(ref3), rtol=1e-2, atol=1e-2)

    print("KERNEL_OK")
</pallas_src>

<mosaic_0001>
module attributes {stable_mosaic.version = 11 : i64} {
  func.func @potential_kernel(%arg0: i32, %arg1: memref<3x128xf32, #tpu.memory_space<vmem>>, %arg2: memref<32x3xf32, #tpu.memory_space<vmem>>, %arg3: memref<32x1xf32, #tpu.memory_space<vmem>>, %arg4: memref<32x32xbf16, #tpu.memory_space<vmem>>, %arg5: memref<32x1xf32, #tpu.memory_space<vmem>>, %arg6: memref<128x32xbf16, #tpu.memory_space<vmem>>, %arg7: memref<128x1xf32, #tpu.memory_space<vmem>>, %arg8: memref<128x128xbf16, #tpu.memory_space<vmem>>, %arg9: memref<128x1xf32, #tpu.memory_space<vmem>>, %arg10: memref<128x1xf32, #tpu.memory_space<vmem>>, %arg11: memref<1x1xf32, #tpu.memory_space<vmem>>, %arg12: memref<1x128xf32, #tpu.memory_space<vmem>>) attributes {dimension_semantics = [#tpu.dimension_semantics<parallel>], iteration_bounds = array<i64: 1>, scalar_prefetch = 0 : i64, scratch_operands = 0 : i64, tpu.core_type = #tpu.core_type<tc>, window_params = [{transform_indices = @transform_0, window_bounds = array<i64: 3, 128>}, {pipeline_mode = #tpu.pipeline_mode<synchronous>, transform_indices = @transform_1, window_bounds = array<i64: 32, 3>}, {pipeline_mode = #tpu.pipeline_mode<synchronous>, transform_indices = @transform_2, window_bounds = array<i64: 32, 1>}, {pipeline_mode = #tpu.pipeline_mode<synchronous>, transform_indices = @transform_3, window_bounds = array<i64: 32, 32>}, {pipeline_mode = #tpu.pipeline_mode<synchronous>, transform_indices = @transform_4, window_bounds = array<i64: 32, 1>}, {pipeline_mode = #tpu.pipeline_mode<synchronous>, transform_indices = @transform_5, window_bounds = array<i64: 128, 32>}, {pipeline_mode = #tpu.pipeline_mode<synchronous>, transform_indices = @transform_6, window_bounds = array<i64: 128, 1>}, {pipeline_mode = #tpu.pipeline_mode<synchronous>, transform_indices = @transform_7, window_bounds = array<i64: 128, 128>}, {pipeline_mode = #tpu.pipeline_mode<synchronous>, transform_indices = @transform_8, window_bounds = array<i64: 128, 1>}, {pipeline_mode = #tpu.pipeline_mode<synchronous>, transform_indices = @transform_9, window_bounds = array<i64: 128, 1>}, {pipeline_mode = #tpu.pipeline_mode<synchronous>, transform_indices = @transform_10, window_bounds = array<i64: 1, 1>}, {transform_indices = @transform_11, window_bounds = array<i64: 1, 128>}]} {
    %c0 = arith.constant 0 : index
    %c0_0 = arith.constant 0 : index
    %0 = vector.load %arg1[%c0, %c0_0] : memref<3x128xf32, #tpu.memory_space<vmem>>, vector<3x128xf32>
    %c0_1 = arith.constant 0 : index
    %c0_2 = arith.constant 0 : index
    %1 = vector.load %arg2[%c0_1, %c0_2] : memref<32x3xf32, #tpu.memory_space<vmem>>, vector<32x3xf32>
    %2 = vector.extract_strided_slice %1 {offsets = [0, 0], sizes = [32, 1], strides = [1, 1]} : vector<32x3xf32> to vector<32x1xf32>
    %3 = vector.extract_strided_slice %1 {offsets = [0, 1], sizes = [32, 1], strides = [1, 1]} : vector<32x3xf32> to vector<32x1xf32>
    %4 = vector.extract_strided_slice %1 {offsets = [0, 2], sizes = [32, 1], strides = [1, 1]} : vector<32x3xf32> to vector<32x1xf32>
    %5 = vector.extract_strided_slice %0 {offsets = [0, 0], sizes = [1, 128], strides = [1, 1]} : vector<3x128xf32> to vector<1x128xf32>
    %6 = vector.broadcast %2 : vector<32x1xf32> to vector<32x128xf32>
    %7 = vector.broadcast %5 : vector<1x128xf32> to vector<32x128xf32>
    %8 = arith.mulf %6, %7 : vector<32x128xf32>
    %9 = vector.extract_strided_slice %0 {offsets = [1, 0], sizes = [1, 128], strides = [1, 1]} : vector<3x128xf32> to vector<1x128xf32>
    %10 = vector.broadcast %3 : vector<32x1xf32> to vector<32x128xf32>
    %11 = vector.broadcast %9 : vector<1x128xf32> to vector<32x128xf32>
    %12 = arith.mulf %10, %11 : vector<32x128xf32>
    %13 = arith.addf %8, %12 : vector<32x128xf32>
    %14 = vector.extract_strided_slice %0 {offsets = [2, 0], sizes = [1, 128], strides = [1, 1]} : vector<3x128xf32> to vector<1x128xf32>
    %15 = vector.broadcast %4 : vector<32x1xf32> to vector<32x128xf32>
    %16 = vector.broadcast %14 : vector<1x128xf32> to vector<32x128xf32>
    %17 = arith.mulf %15, %16 : vector<32x128xf32>
    %18 = arith.addf %13, %17 : vector<32x128xf32>
    %c0_3 = arith.constant 0 : index
    %c0_4 = arith.constant 0 : index
    %19 = vector.load %arg3[%c0_3, %c0_4] : memref<32x1xf32, #tpu.memory_space<vmem>>, vector<32x1xf32>
    %20 = vector.broadcast %19 : vector<32x1xf32> to vector<32x128xf32>
    %21 = arith.addf %18, %20 : vector<32x128xf32>
    %cst = arith.constant 0.000000e+00 : f32
    %22 = vector.broadcast %cst : f32 to vector<32x128xf32>
    %23 = arith.maximumf %21, %22 : vector<32x128xf32>
    %24 = arith.truncf %23 : vector<32x128xf32> to vector<32x128xbf16>
    %c0_5 = arith.constant 0 : index
    %c0_6 = arith.constant 0 : index
    %25 = vector.load %arg4[%c0_5, %c0_6] : memref<32x32xbf16, #tpu.memory_space<vmem>>, vector<32x32xbf16>
    %cst_7 = arith.constant dense<0.000000e+00> : vector<32x128xf32>
    %26 = tpu.matmul %25, %24, %cst_7 {dimension_numbers = #tpu.dot_dimension_numbers<[1], [0], [0], [1], [0, 0, 1, 1], [], []>} : vector<32x32xbf16>, vector<32x128xbf16>, vector<32x128xf32> -> vector<32x128xf32>
    %c0_8 = arith.constant 0 : index
    %c0_9 = arith.constant 0 : index
    %27 = vector.load %arg5[%c0_8, %c0_9] : memref<32x1xf32, #tpu.memory_space<vmem>>, vector<32x1xf32>
    %28 = vector.broadcast %27 : vector<32x1xf32> to vector<32x128xf32>
    %29 = arith.addf %26, %28 : vector<32x128xf32>
    %cst_10 = arith.constant 0.000000e+00 : f32
    %30 = vector.broadcast %cst_10 : f32 to vector<32x128xf32>
    %31 = arith.maximumf %29, %30 : vector<32x128xf32>
    %32 = arith.truncf %31 : vector<32x128xf32> to vector<32x128xbf16>
    %c0_11 = arith.constant 0 : index
    %c0_12 = arith.constant 0 : index
    %33 = vector.load %arg6[%c0_11, %c0_12] : memref<128x32xbf16, #tpu.memory_space<vmem>>, vector<128x32xbf16>
    %cst_13 = arith.constant dense<0.000000e+00> : vector<128x128xf32>
    %34 = tpu.matmul %33, %32, %cst_13 {dimension_numbers = #tpu.dot_dimension_numbers<[1], [0], [0], [1], [0, 0, 1, 1], [], []>} : vector<128x32xbf16>, vector<32x128xbf16>, vector<128x128xf32> -> vector<128x128xf32>
    %c0_14 = arith.constant 0 : index
    %c0_15 = arith.constant 0 : index
    %35 = vector.load %arg7[%c0_14, %c0_15] : memref<128x1xf32, #tpu.memory_space<vmem>>, vector<128x1xf32>
    %36 = vector.broadcast %35 : vector<128x1xf32> to vector<128x128xf32>
    %37 = arith.addf %34, %36 : vector<128x128xf32>
    %cst_16 = arith.constant 0.000000e+00 : f32
    %38 = vector.broadcast %cst_16 : f32 to vector<128x128xf32>
    %39 = arith.maximumf %37, %38 : vector<128x128xf32>
    %c0_17 = arith.constant 0 : index
    %c0_18 = arith.constant 0 : index
    %40 = vector.load %arg8[%c0_17, %c0_18] : memref<128x128xbf16, #tpu.memory_space<vmem>>, vector<128x128xbf16>
    %41 = arith.truncf %39 : vector<128x128xf32> to vector<128x128xbf16>
    %cst_19 = arith.constant dense<0.000000e+00> : vector<128x128xf32>
    %42 = tpu.matmul %40, %41, %cst_19 {dimension_numbers = #tpu.dot_dimension_numbers<[1], [0], [0], [1], [0, 0, 1, 1], [], []>} : vector<128x128xbf16>, vector<128x128xbf16>, vector<128x128xf32> -> vector<128x128xf32>
    %c0_20 = arith.constant 0 : index
    %c0_21 = arith.constant 0 : index
    %43 = vector.load %arg9[%c0_20, %c0_21] : memref<128x1xf32, #tpu.memory_space<vmem>>, vector<128x1xf32>
    %44 = vector.broadcast %43 : vector<128x1xf32> to vector<128x128xf32>
    %45 = arith.addf %42, %44 : vector<128x128xf32>
    %cst_22 = arith.constant 0.000000e+00 : f32
    %46 = vector.broadcast %cst_22 : f32 to vector<128x128xf32>
    %47 = arith.maximumf %45, %46 : vector<128x128xf32>
    %48 = arith.addf %39, %47 : vector<128x128xf32>
    %c0_23 = arith.constant 0 : index
    %c0_24 = arith.constant 0 : index
    %49 = vector.load %arg10[%c0_23, %c0_24] : memref<128x1xf32, #tpu.memory_space<vmem>>, vector<128x1xf32>
    %50 = vector.broadcast %49 : vector<128x1xf32> to vector<128x128xf32>
    %51 = arith.mulf %48, %50 : vector<128x128xf32>
    %cst_25 = arith.constant dense<0.000000e+00> : vector<128xf32>
    %52 = vector.multi_reduction <add>, %51, %cst_25 [0] : vector<128x128xf32> to vector<128xf32>
    %53 = vector.shape_cast %52 : vector<128xf32> to vector<1x128xf32>
    %c0_26 = arith.constant 0 : index
    %c0_27 = arith.constant 0 : index
    %54 = vector.load %arg11[%c0_26, %c0_27] : memref<1x1xf32, #tpu.memory_space<vmem>>, vector<1x1xf32>
    %55 = vector.broadcast %54 : vector<1x1xf32> to vector<1x128xf32>
    %56 = arith.addf %53, %55 : vector<1x128xf32>
    %c0_28 = arith.constant 0 : index
    %c0_29 = arith.constant 0 : index
    %57 = vector.load %arg12[%c0_28, %c0_29] : memref<1x128xf32, #tpu.memory_space<vmem>>, vector<1x128xf32>
    tpu.vector_store %arg12[%c0_28, %c0_29], %56 {strides = array<i32>} : memref<1x128xf32, #tpu.memory_space<vmem>>, vector<1x128xf32>,
    return
  }
  func.func @transform_0(%arg0: i32) -> (i32, i32) {
    %c0_i32 = arith.constant 0 : i32
    %c0_i32_0 = arith.constant 0 : i32
    return %c0_i32, %arg0 : i32, i32
  }
  func.func @transform_1(%arg0: i32) -> (i32, i32) {
    %c0_i32 = arith.constant 0 : i32
    %c0_i32_0 = arith.constant 0 : i32
    %c0_i32_1 = arith.constant 0 : i32
    return %c0_i32, %c0_i32_0 : i32, i32
  }
  func.func @transform_2(%arg0: i32) -> (i32, i32) {
    %c0_i32 = arith.constant 0 : i32
    %c0_i32_0 = arith.constant 0 : i32
    %c0_i32_1 = arith.constant 0 : i32
    return %c0_i32, %c0_i32_0 : i32, i32
  }
  func.func @transform_3(%arg0: i32) -> (i32, i32) {
    %c0_i32 = arith.constant 0 : i32
    %c0_i32_0 = arith.constant 0 : i32
    %c0_i32_1 = arith.constant 0 : i32
    return %c0_i32, %c0_i32_0 : i32, i32
  }
  func.func @transform_4(%arg0: i32) -> (i32, i32) {
    %c0_i32 = arith.constant 0 : i32
    %c0_i32_0 = arith.constant 0 : i32
    %c0_i32_1 = arith.constant 0 : i32
    return %c0_i32, %c0_i32_0 : i32, i32
  }
  func.func @transform_5(%arg0: i32) -> (i32, i32) {
    %c0_i32 = arith.constant 0 : i32
    %c0_i32_0 = arith.constant 0 : i32
    %c0_i32_1 = arith.constant 0 : i32
    return %c0_i32, %c0_i32_0 : i32, i32
  }
  func.func @transform_6(%arg0: i32) -> (i32, i32) {
    %c0_i32 = arith.constant 0 : i32
    %c0_i32_0 = arith.constant 0 : i32
    %c0_i32_1 = arith.constant 0 : i32
    return %c0_i32, %c0_i32_0 : i32, i32
  }
  func.func @transform_7(%arg0: i32) -> (i32, i32) {
    %c0_i32 = arith.constant 0 : i32
    %c0_i32_0 = arith.constant 0 : i32
    %c0_i32_1 = arith.constant 0 : i32
    return %c0_i32, %c0_i32_0 : i32, i32
  }
  func.func @transform_8(%arg0: i32) -> (i32, i32) {
    %c0_i32 = arith.constant 0 : i32
    %c0_i32_0 = arith.constant 0 : i32
    %c0_i32_1 = arith.constant 0 : i32
    return %c0_i32, %c0_i32_0 : i32, i32
  }
  func.func @transform_9(%arg0: i32) -> (i32, i32) {
    %c0_i32 = arith.constant 0 : i32
    %c0_i32_0 = arith.constant 0 : i32
    %c0_i32_1 = arith.constant 0 : i32
    return %c0_i32, %c0_i32_0 : i32, i32
  }
  func.func @transform_10(%arg0: i32) -> (i32, i32) {
    %c0_i32 = arith.constant 0 : i32
    %c0_i32_0 = arith.constant 0 : i32
    %c0_i32_1 = arith.constant 0 : i32
    return %c0_i32, %c0_i32_0 : i32, i32
  }
  func.func @transform_11(%arg0: i32) -> (i32, i32) {
    %c0_i32 = arith.constant 0 : i32
    %c0_i32_0 = arith.constant 0 : i32
    return %c0_i32, %arg0 : i32, i32
  }
}

</mosaic_0001>

<bundles_post_ra>
// kernel: tpu_custom_call.1
= control target key start
LH: loop header
LB: loop body
LE: loop exit
PB: predicated region body
PF: predicated region fallthrough
CT: control target
= control target key end

     0   :  { %s1468_s0 = inlined_call_operand.vmem [shape: f32[3,128], index: 0, kind: input, shape index: {}]   ;;  %s1469_s1 = inlined_call_operand.vmem [shape: f32[32,3], index: 1, kind: input, shape index: {}]   ;;  %s1470_s2 = inlined_call_operand.vmem [shape: f32[32,1], index: 2, kind: input, shape index: {}]   ;;  %s1471_s3 = inlined_call_operand.vmem [shape: bf16[32,32], index: 3, kind: input, shape index: {}]   ;;  %s1472_s4 = inlined_call_operand.vmem [shape: f32[32,1], index: 4, kind: input, shape index: {}]   ;;  %s1473_s5 = inlined_call_operand.vmem [shape: bf16[128,32], index: 5, kind: input, shape index: {}]   ;;  %s1474_s6 = inlined_call_operand.vmem [shape: f32[128,1], index: 6, kind: input, shape index: {}]   ;;  %s1475_s7 = inlined_call_operand.vmem [shape: bf16[128,128], index: 7, kind: input, shape index: {}]   ;;  %s1476_s8 = inlined_call_operand.vmem [shape: f32[128,1], index: 8, kind: input, shape index: {}]   ;;  %s1477_s9 = inlined_call_operand.vmem [shape: f32[128,1], index: 9, kind: input, shape index: {}]   ;;  %s1478_s10 = inlined_call_operand.<no memory space> [shape: f32[1,1], index: 10, kind: input, shape index: {}]   ;;  %s1479_s11 = inlined_call_operand.hbm [shape: f32[1,128], index: 11, kind: output, shape index: {}]  }
   0x1   :  { %v16_v0 = vstv %s1478_s10 }
   0x2   :  { %17 = vst [vmem:[#allocation2] sm:$0x1] %v16_v0 }
   0x3   :  { %v45_v1 = vld [vmem:[%s1469_s1 + $0x10] sm:$0xff]  ;;  %v44_v2 = vld [vmem:[%s1469_s1 + $0x8] sm:$0xff]  ;;  %v1024_v3 = vmov 2   ;;  %v1025_v4 = vmov 1  }
   0x4   :  { %989 = vset.pattern.permute.xlu2 %v1024_v3  ;;  %992 = vset.pattern.permute.xlu0 %v1025_v4 }
   0x5   :  { %18 = vsyncpa [#allocation4], 0  ;;  %988 = vset.pattern.permute.xlu1 %v1025_v4  ;;  %106 = vperm.xlu2 %989, %v45_v1   ;;  %v46_v5 = vld [vmem:[%s1469_s1 + $0x18] sm:$0xff]  ;;  %v1026_v6 = vmov 0   ;;  %v43_v7 = vld [vmem:[%s1469_s1] sm:$0xff]  ;;  %vm194_vm0 = vcmask 261120  }
   0x6   :  { %81 = vperm.xlu1 %988, %v45_v1   ;;  %77 = vperm.xlu0 %992, %v44_v2   ;;  %v122_v8 = vld [vmem:[%s1470_s2] sm:$0xff]  ;;  %v124_v9 = vld [vmem:[%s1470_s2 + $0x10] sm:$0xff]  ;;  %v125_v10 = vld [vmem:[%s1470_s2 + $0x18] sm:$0xff]  ;;  %s865_s27 = sshll.u32 %s1479_s11, 4  ;;  %s866_s27 = int_to_ptr.hbm [resolvable:$true] %s865_s27 }
   0x7   :  { %v161_v11 = vld [vmem:[%s1472_s4 + $0x8] sm:$0xff]  ;;  %v162_v13 = vld [vmem:[%s1472_s4 + $0x10] sm:$0xff]  ;;  %v254_v14 = vld [vmem:[%s1474_s6 + $0x60] sm:$0xff] }
   0x8   :  { %v123_v12 = vld [vmem:[%s1470_s2 + $0x8] sm:$0xff]  ;;  %v163_v15 = vld [vmem:[%s1472_s4 + $0x18] sm:$0xff]  ;;  %v160_v16 = vld [vmem:[%s1472_s4] sm:$0xff] }
   0x9   :  { %v253_v17 = vld [vmem:[%s1474_s6 + $0x58] sm:$0xff]  ;;  %v256_v18 = vld [vmem:[%s1474_s6 + $0x70] sm:$0xff]  ;;  %v255_v21 = vld [vmem:[%s1474_s6 + $0x68] sm:$0xff] }
   0xa   :  { %v257_v19 = vld [vmem:[%s1474_s6 + $0x78] sm:$0xff]  ;;  %v248_v20 = vld [vmem:[%s1474_s6 + $0x30] sm:$0xff]  ;;  %v247_v23 = vld [vmem:[%s1474_s6 + $0x28] sm:$0xff] }
   0xb   :  { %v252_v22 = vld [vmem:[%s1474_s6 + $0x50] sm:$0xff]  ;;  %v250_v24 = vld [vmem:[%s1474_s6 + $0x40] sm:$0xff]  ;;  %v251_v25 = vld [vmem:[%s1474_s6 + $0x48] sm:$0xff] }
   0xc   :  { %v242_v26 = vld [vmem:[%s1474_s6] sm:$0xff]  ;;  %v249_v27 = vld [vmem:[%s1474_s6 + $0x38] sm:$0xff]  ;;  %v492_v29 = vld [vmem:[%s1476_s8 + $0x8] sm:$0xff] }
   0xd   :  { %110 = vperm.xlu2 %989, %v46_v5   ;;  %v246_v28 = vld [vmem:[%s1474_s6 + $0x20] sm:$0xff]  ;;  %v244_v30 = vld [vmem:[%s1474_s6 + $0x10] sm:$0xff]  ;;  %v245_v31 = vld [vmem:[%s1474_s6 + $0x18] sm:$0xff] }
   0xe   :  { %85 = vperm.xlu1 %988, %v46_v5   ;;  %993 = vset.pattern.permute.xlu0 %v1026_v6  ;;  %v495_v32 = vld [vmem:[%s1476_s8 + $0x20] sm:$0xff]  ;;  %v243_v33 = vld [vmem:[%s1474_s6 + $0x8] sm:$0xff]  ;;  %v498_v35 = vld [vmem:[%s1476_s8 + $0x38] sm:$0xff] }
   0xf   :  { %59 = vperm.xlu0 %993, %v45_v1   ;;  %v491_v34 = vld [vmem:[%s1476_s8] sm:$0xff]  ;;  %v493_v36 = vld [vmem:[%s1476_s8 + $0x10] sm:$0xff]  ;;  %v494_v37 = vld [vmem:[%s1476_s8 + $0x18] sm:$0xff] }
  0x10   :  { %v501_v39 = vld [vmem:[%s1476_s8 + $0x50] sm:$0xff]  ;;  %v496_v40 = vld [vmem:[%s1476_s8 + $0x28] sm:$0xff]  ;;  %v499_v46 = vld [vmem:[%s1476_s8 + $0x40] sm:$0xff] }
  0x11   :  { %v497_v41 = vld [vmem:[%s1476_s8 + $0x30] sm:$0xff]  ;;  %v504_v45 = vld [vmem:[%s1476_s8 + $0x68] sm:$0xff]  ;;  %v716_v50 = vld [vmem:[%s1477_s9] sm:$0xff] }
  0x12   :  { %v500_v47 = vld [vmem:[%s1476_s8 + $0x48] sm:$0xff]  ;;  %v502_v52 = vld [vmem:[%s1476_s8 + $0x58] sm:$0xff]  ;;  %v503_v53 = vld [vmem:[%s1476_s8 + $0x60] sm:$0xff] }
  0x13   :  { %v42_v55 = vld [vmem:[%s1468_s0] sm:$0x7]  ;;  %v719_v58 = vld [vmem:[%s1477_s9 + $0x18] sm:$0xff]  ;;  %v505_v61 = vld [vmem:[%s1476_s8 + $0x70] sm:$0xff] }
  0x14   :  { %v67_v57 = vperm.slane %v42_v55, 0  ;;  %v88_v59 = vperm.slane %v42_v55, 1  ;;  %v506_v62 = vld [vmem:[%s1476_s8 + $0x78] sm:$0xff]  ;;  %v113_v0 = vperm.slane %v42_v55, 2 }
  0x15   :  { %991 = vset.pattern.permute.xlu2 %v1025_v4 }
  0x16   :  { %990 = vset.pattern.permute.xlu1 %v1026_v6  ;;  %73 = vperm.xlu2 %991, %v43_v7  }
  0x17   :  { %64 = vperm.xlu0 %993, %v46_v5   ;;  %54 = vperm.xlu1 %990, %v44_v2  }
  0x1e   :  { %995 = vset.pattern.permute.xlu2 %v1024_v3 }
  0x1f   :  { %994 = vset.pattern.permute.xlu1 %v1024_v3  ;;  %49 = vperm.xlu0 %993, %v43_v7  }
  0x20   :  { %98 = vperm.xlu1 %994, %v43_v7   ;;  %102 = vperm.xlu2 %995, %v44_v2   ;;  %v722_v7 = vld [vmem:[%s1477_s9 + $0x30] sm:$0xff] }
  0x27   :  { %128 = vperm.xlu0 %993, %v122_v8  }
  0x28   :  { %996 = vset.pattern.permute.xlu1 %v1026_v6  ;;  %997 = vset.pattern.permute.xlu2 %v1026_v6 }
  0x29   :  { %138 = vperm.xlu1 %996, %v124_v9   ;;  %143 = vperm.xlu2 %997, %v125_v10   ;;  %v717_v10 = vld [vmem:[%s1477_s9 + $0x8] sm:$0xff] }
  0x2f   :  { %171 = vperm.xlu0 %993, %v161_v11   ;;  %v718_v11 = vld [vmem:[%s1477_s9 + $0x10] sm:$0xff] }
  0x31   :  { %133 = vperm.xlu1 %996, %v123_v12   ;;  %176 = vperm.xlu2 %997, %v162_v13  }
  0x37   :  { %320 = vperm.xlu0 %993, %v254_v14  }
  0x39   :  { %181 = vperm.xlu1 %996, %v163_v15   ;;  %166 = vperm.xlu2 %997, %v160_v16  }
  0x3f   :  { %315 = vperm.xlu0 %993, %v253_v17  }
  0x41   :  { %330 = vperm.xlu1 %996, %v256_v18   ;;  %335 = vperm.xlu2 %997, %v257_v19  }
  0x47   :  { %290 = vperm.xlu0 %993, %v248_v20  }
  0x49   :  { %325 = vperm.xlu1 %996, %v255_v21   ;;  %310 = vperm.xlu2 %997, %v252_v22  }
  0x4f   :  { %285 = vperm.xlu0 %993, %v247_v23  }
  0x51   :  { %300 = vperm.xlu1 %996, %v250_v24   ;;  %305 = vperm.xlu2 %997, %v251_v25   ;;  %v725_v25 = vld [vmem:[%s1477_s9 + $0x48] sm:$0xff] }
  0x57   :  { %260 = vperm.xlu0 %993, %v242_v26  }
  0x59   :  { %295 = vperm.xlu1 %996, %v249_v27   ;;  %280 = vperm.xlu2 %997, %v246_v28  }
  0x5f   :  { %514 = vperm.xlu0 %993, %v492_v29   ;;  %v107_v38 = vpop.permute.xlu2 %106  ;;  %v720_v29 = vld [vmem:[%s1477_s9 + $0x20] sm:$0xff] }
  0x60   :  { %v116_v13 = vmul.f32 %v113_v0, %v107_v38 }
  0x61   :  { %270 = vperm.xlu1 %996, %v244_v30   ;;  %275 = vperm.xlu2 %997, %v245_v31   ;;  %v721_v30 = vld [vmem:[%s1477_s9 + $0x28] sm:$0xff] }
  0x67   :  { %529 = vperm.xlu0 %993, %v495_v32   ;;  %v111_v44 = vpop.permute.xlu2 %110 }
  0x68   :  { %v117_v5 = vmul.f32 %v113_v0, %v111_v44 }
  0x69   :  { %265 = vperm.xlu1 %996, %v243_v33   ;;  %509 = vperm.xlu2 %997, %v491_v34  }
  0x6f   :  { %544 = vperm.xlu0 %993, %v498_v35  }
  0x70   :  { %v74_v51 = vpop.permute.xlu2 %73 }
  0x71   :  { %519 = vperm.xlu1 %996, %v493_v36   ;;  %524 = vperm.xlu2 %997, %v494_v37   ;;  %v89_v16 = vmul.f32 %v88_v59, %v74_v51  ;;  %v957_v51 = vld [vmem:[%s1471_s3 + $0x8] sm:$0xff] }
  0x77   :  { %559 = vperm.xlu0 %993, %v501_v39   ;;  %v728_v39 = vld [vmem:[%s1477_s9 + $0x60] sm:$0xff] }
  0x78   :  { %v82_v42 = vpop.permute.xlu1 %81  ;;  %v78_v43 = vpop.permute.xlu0 %77 }
  0x79   :  { %534 = vperm.xlu1 %996, %v496_v40   ;;  %539 = vperm.xlu2 %997, %v497_v41   ;;  %v91_v6 = vmul.f32 %v88_v59, %v82_v42  ;;  %v90_v21 = vmul.f32 %v88_v59, %v78_v43  ;;  %v723_v42 = vld [vmem:[%s1477_s9 + $0x38] sm:$0xff]  ;;  %v724_v43 = vld [vmem:[%s1477_s9 + $0x40] sm:$0xff] }
  0x7a   :  { %v103_v63 = vpop.permute.xlu2 %102 }
  0x7b   :  { %v115_v26 = vmul.f32 %v113_v0, %v103_v63 }
  0x7f   :  { %574 = vperm.xlu0 %993, %v504_v45   ;;  %v956_v45 = vld [vmem:[%s1471_s3] sm:$0xff] }
  0x80   :  { %v86_v48 = vpop.permute.xlu1 %85 }
  0x81   :  { %v60_v49 = vpop.permute.xlu0 %59  ;;  %549 = vperm.xlu1 %996, %v499_v46   ;;  %554 = vperm.xlu2 %997, %v500_v47   ;;  %v92_v1 = vmul.f32 %v88_v59, %v86_v48  ;;  %v731_v46 = vld [vmem:[%s1477_s9 + $0x78] sm:$0xff]  ;;  %v726_v47 = vld [vmem:[%s1477_s9 + $0x50] sm:$0xff] }
  0x82   :  { %v70_v2 = vmul.f32 %v67_v57, %v60_v49  ;;  %v727_v48 = vld [vmem:[%s1477_s9 + $0x58] sm:$0xff]  ;;  %v729_v49 = vld [vmem:[%s1477_s9 + $0x68] sm:$0xff] }
  0x83   :  { %v144_v15 = vpop.permute.xlu2 %143 }
  0x84   :  { %v95_v9 = vadd.f32 %v91_v6, %v70_v2 }
  0x86   :  { %v120_v18 = vadd.f32 %v116_v13, %v95_v9  ;;  %v959_v9 = vld [vmem:[%s1473_s5 + $0x8] sm:$0xff]  ;;  %v964_v13 = vld [vmem:[%s1473_s5 + $0x30] sm:$0xff] }
  0x87   :  { %734 = vperm.xlu0 %993, %v716_v50   ;;  %v730_v50 = vld [vmem:[%s1477_s9 + $0x70] sm:$0xff] }
  0x89   :  { %v55_v54 = vpop.permute.xlu1 %54  ;;  %564 = vperm.xlu1 %996, %v502_v52   ;;  %569 = vperm.xlu2 %997, %v503_v53   ;;  %v65_v56 = vpop.permute.xlu0 %64  ;;  %v849_v52 = vld [vmem:[#allocation2] sm:$0x1] }
  0x8a   :  { %v71_v60 = vmul.f32 %v67_v57, %v65_v56  ;;  %v69_v17 = vmul.f32 %v67_v57, %v55_v54 }
  0x8b   :  { %v177_v55 = vpop.permute.xlu2 %176 }
  0x8c   :  { %v96_v3 = vadd.f32 %v92_v1, %v71_v60  ;;  %v94_v27 = vadd.f32 %v90_v21, %v69_v17 }
  0x8e   :  { %v121_v12 = vadd.f32 %v117_v5, %v96_v3  ;;  %v119_v36 = vadd.f32 %v115_v26, %v94_v27 }
  0x8f   :  { %749 = vperm.xlu0 %993, %v719_v58  }
  0x90   :  { %v149_v19 = vadd.f32 %v144_v15, %v121_v12  ;;  %v963_v12 = vld [vmem:[%s1473_s5 + $0x28] sm:$0xff] }
  0x91   :  { %579 = vperm.xlu1 %996, %v505_v61   ;;  %584 = vperm.xlu2 %997, %v506_v62   ;;  %v50_v8 = vpop.permute.xlu0 %49 }
  0x92   :  { %v99_v4 = vpop.permute.xlu1 %98  ;;  %v68_v14 = vmul.f32 %v67_v57, %v50_v8  ;;  %v153_v31 = vmax.f32 %v149_v19, 0.0  ;;  %v960_v8 = vld [vmem:[%s1473_s5 + $0x10] sm:$0xff] }
  0x93   :  { %v114_v23 = vmul.f32 %v113_v0, %v99_v4  ;;  %v167_v63 = vpop.permute.xlu2 %166 }
  0x94   :  { %v93_v22 = vadd.f32 %v89_v16, %v68_v14  ;;  %v965_v14 = vld [vmem:[%s1473_s5 + $0x38] sm:$0xff] }
  0x96   :  { %v118_v33 = vadd.f32 %v114_v23, %v93_v22 }
  0x97   :  { %764 = vperm.xlu0 %993, %v722_v7   ;;  %v958_v7 = vld [vmem:[%s1473_s5] sm:$0xff] }
  0x99   :  { %739 = vperm.xlu1 %996, %v717_v10   ;;  %744 = vperm.xlu2 %997, %v718_v11   ;;  %v129_v32 = vpop.permute.xlu0 %128  ;;  %v961_v10 = vld [vmem:[%s1473_s5 + $0x18] sm:$0xff]  ;;  %v962_v11 = vld [vmem:[%s1473_s5 + $0x20] sm:$0xff] }
  0x9a   :  { %v146_v35 = vadd.f32 %v129_v32, %v118_v33 }
  0x9b   :  { %v139_v20 = vpop.permute.xlu1 %138 }
  0x9c   :  { %v148_v24 = vadd.f32 %v139_v20, %v120_v18  ;;  %v150_v40 = vmax.f32 %v146_v35, 0.0 }
  0x9e   :  { %v152_v28 = vmax.f32 %v148_v24, 0.0 }
  0x9f   :  { %779 = vperm.xlu0 %993, %v725_v25   ;;  %v336_v25 = vpop.permute.xlu2 %335 }
  0xa0   :  { %v155_v34 = vpack.c.bf16 %v153_v31, %v152_v28 }
  0xa1   :  { %754 = vperm.xlu1 %996, %v720_v29   ;;  %759 = vperm.xlu2 %997, %v721_v30   ;;  %v172_v57 = vpop.permute.xlu0 %171 }
  0xa2   :  { %207 = vmatpush.bf16.msra.mxu0 %v155_v34 }
  0xa3   :  { %v134_v37 = vpop.permute.xlu1 %133 }
  0xa4   :  { %v147_v38 = vadd.f32 %v134_v37, %v119_v36 }
  0xa6   :  { %v151_v41 = vmax.f32 %v147_v38, 0.0 }
  0xa7   :  { %794 = vperm.xlu0 %993, %v728_v39   ;;  %v311_v30 = vpop.permute.xlu2 %310 }
  0xa8   :  { %v154_v44 = vpack.c.bf16 %v151_v41, %v150_v40 }
  0xa9   :  { %769 = vperm.xlu1 %996, %v723_v42   ;;  %774 = vperm.xlu2 %997, %v724_v43   ;;  %v321_v28 = vpop.permute.xlu0 %320 }
  0xaa   :  { %208 = vmatpush.bf16.msra.mxu0 %v154_v44 }
  0xab   :  { %v182_v59 = vpop.permute.xlu1 %181 }
  0xad   :  { %882 = vmatmul.msk.bf16.vlgmr.msra.gmra.mxu0 %vm194_vm0, %v956_v45 }
  0xaf   :  { %809 = vperm.xlu0 %993, %v731_v46   ;;  %v306_v36 = vpop.permute.xlu2 %305 }
  0xb1   :  { %784 = vperm.xlu1 %996, %v726_v47   ;;  %789 = vperm.xlu2 %997, %v727_v48   ;;  %v316_v33 = vpop.permute.xlu0 %315 }
  0xb3   :  { %v331_v23 = vpop.permute.xlu1 %330 }
  0xb9   :  { %799 = vperm.xlu1 %996, %v729_v49   ;;  %804 = vperm.xlu2 %997, %v730_v50   ;;  %v291_v47 = vpop.permute.xlu0 %290 }
  0xbb   :  { %v326_v26 = vpop.permute.xlu1 %325 }
  0xbd   :  { %883 = vmatmul.msk.bf16.gmra.mxu0 %vm194_vm0, %v957_v51 }
  0xc1   :  { %852 = vperm.xlu1 %996, %v849_v52  }
  0xc3   :  { %v301_v32 = vpop.permute.xlu1 %300 }
  0xcb   :  { %v296_v43 = vpop.permute.xlu1 %295 }
 0x12a   :  { %v210_v53 = vpop.f32.mrf.mxu0 }
 0x12b   :  { %v211_v0 = vadd.f32 %v210_v53, %v167_v63  ;;  %v286_v63 = vpop.permute.xlu0 %285 }
 0x12d   :  { %v220_v5 = vmax.f32 %v211_v0, 0.0 }
 0x132   :  { %v212_v54 = vpop.f32.mrf.mxu0 }
 0x133   :  { %v213_v61 = vadd.f32 %v212_v54, %v172_v57  ;;  %v281_v54 = vpop.permute.xlu2 %280 }
 0x135   :  { %v221_v3 = vmax.f32 %v213_v61, 0.0 }
 0x137   :  { %v224_v6 = vpack.c.bf16 %v221_v3, %v220_v5 }
 0x13a   :  { %v215_v56 = vpop.f32.mrf.mxu0 }
 0x13b   :  { %v216_v58 = vadd.f32 %v215_v56, %v177_v55 }
 0x13d   :  { %v222_v1 = vmax.f32 %v216_v58, 0.0 }
 0x142   :  { %v217_v60 = vpop.f32.mrf.mxu0 }
 0x143   :  { %v218_v62 = vadd.f32 %v217_v60, %v182_v59  ;;  %v271_v60 = vpop.permute.xlu1 %270 }
 0x145   :  { %v223_v2 = vmax.f32 %v218_v62, 0.0 }
 0x147   :  { %v225_v4 = vpack.c.bf16 %v223_v2, %v222_v1 }
 0x149   :  { %408 = vmatpush.bf16.msrb.mxu0 %v225_v4  ;;  %974 = vmatpush.bf16.msra.mxu1 %v225_v4 }
 0x14d   :  { %409 = vmatpush.bf16.msrb.mxu0 %v224_v6  ;;  %975 = vmatpush.bf16.msra.mxu1 %v224_v6  ;;  %v276_v6 = vpop.permute.xlu2 %275 }
 0x150   :  { %916 = vmatmul.msk.bf16.vlgmr.msrb.gmra.mxu0 %vm194_vm0, %v958_v7  ;;  %918 = vmatmul.msk.bf16.vlgmr.msra.gmra.mxu1 %vm194_vm0, %v960_v8 }
 0x160   :  { %917 = vmatmul.msk.bf16.gmra.mxu0 %vm194_vm0, %v959_v9  ;;  %919 = vmatmul.msk.bf16.gmra.mxu1 %vm194_vm0, %v961_v10 }
 0x170   :  { %920 = vmatmul.msk.bf16.gmra.mxu1 %vm194_vm0, %v962_v11 }
 0x180   :  { %921 = vmatmul.msk.bf16.gmra.mxu1 %vm194_vm0, %v963_v12  ;;  %v266_v12 = vpop.permute.xlu1 %265 }
 0x190   :  { %922 = vmatmul.msk.bf16.gmra.mxu1 %vm194_vm0, %v964_v13 }
 0x1a0   :  { %923 = vmatmul.msk.bf16.gmra.mxu1 %vm194_vm0, %v965_v14 }
 0x1cd   :  { %v421_v15 = vpop.f32.mrf.mxu1  ;;  %v411_v29 = vpop.f32.mrf.mxu0 }
 0x1ce   :  { %v1361_v4 = vadd.f32 %v421_v15, %v281_v54 }
 0x1d0   :  { %v1491_v10 = vmax.f32 %v1361_v4, 0.0 }
 0x1d5   :  { %v423_v16 = vpop.f32.mrf.mxu1  ;;  %v413_v34 = vpop.f32.mrf.mxu0 }
 0x1d6   :  { %v1354_v0 = vadd.f32 %v423_v16, %v286_v63  ;;  %v1374_v13 = vadd.f32 %v413_v34, %v266_v12  ;;  %v261_v16 = vpop.permute.xlu0 %260 }
 0x1d8   :  { %v1490_v7 = vmax.f32 %v1354_v0, 0.0 }
 0x1da   :  { %v485_v15 = vpack.c.bf16 %v1490_v7, %v1491_v10 }
 0x1dd   :  { %v426_v17 = vpop.f32.mrf.mxu1  ;;  %v416_v50 = vpop.f32.mrf.mxu0 }
 0x1de   :  { %v1351_v61 = vadd.f32 %v426_v17, %v291_v47  ;;  %v1372_v11 = vadd.f32 %v416_v50, %v271_v60  ;;  %v1381_v17 = vadd.f32 %v411_v29, %v261_v16  ;;  %v969_v29 = vld [vmem:[%s1475_s7 + $0x18] sm:$0xff] }
 0x1e0   :  { %v1489_v5 = vmax.f32 %v1351_v61, 0.0 }
 0x1e5   :  { %v428_v18 = vpop.f32.mrf.mxu1  ;;  %v418_v3 = vpop.f32.mrf.mxu0 }
 0x1e6   :  { %v1344_v57 = vadd.f32 %v428_v18, %v296_v43  ;;  %v1365_v8 = vadd.f32 %v418_v3, %v276_v6  ;;  %v453_v18 = vmax.f32 %v1372_v11, 0.0 }
 0x1e8   :  { %v1487_v1 = vmax.f32 %v1344_v57, 0.0  ;;  %v1492_v14 = vmax.f32 %v1365_v8, 0.0 }
 0x1ea   :  { %v486_v9 = vpack.c.bf16 %v1487_v1, %v1489_v5 }
 0x1ed   :  { %v431_v19 = vpop.f32.mrf.mxu1 }
 0x1ee   :  { %v1341_v55 = vadd.f32 %v431_v19, %v301_v32  ;;  %v452_v19 = vmax.f32 %v1374_v13, 0.0  ;;  %v515_v32 = vpop.permute.xlu0 %514 }
 0x1f0   :  { %v1488_v62 = vmax.f32 %v1341_v55, 0.0 }
 0x1f5   :  { %v433_v20 = vpop.f32.mrf.mxu1 }
 0x1f6   :  { %v1334_v51 = vadd.f32 %v433_v20, %v306_v36  ;;  %v484_v20 = vpack.c.bf16 %v1492_v14, %v453_v18  ;;  %v530_v36 = vpop.permute.xlu0 %529 }
 0x1f8   :  { %v1486_v58 = vmax.f32 %v1334_v51, 0.0 }
 0x1fa   :  { %v487_v2 = vpack.c.bf16 %v1486_v58, %v1488_v62 }
 0x1fd   :  { %v436_v21 = vpop.f32.mrf.mxu1 }
 0x1fe   :  { %v1331_v48 = vadd.f32 %v436_v21, %v311_v30  ;;  %v451_v21 = vmax.f32 %v1381_v17, 0.0  ;;  %v973_v30 = vld [vmem:[%s1475_s7 + $0x38] sm:$0xff] }
 0x200   :  { %v1485_v56 = vmax.f32 %v1331_v48, 0.0 }
 0x205   :  { %v438_v22 = vpop.f32.mrf.mxu1 }
 0x206   :  { %v1324_v44 = vadd.f32 %v438_v22, %v316_v33  ;;  %v483_v22 = vpack.c.bf16 %v452_v19, %v451_v21  ;;  %v520_v33 = vpop.permute.xlu1 %519 }
 0x208   :  { %v1484_v52 = vmax.f32 %v1324_v44, 0.0 }
 0x20a   :  { %v488_v59 = vpack.c.bf16 %v1484_v52, %v1485_v56 }
 0x20d   :  { %v441_v24 = vpop.f32.mrf.mxu1 }
 0x20e   :  { %v1320_v40 = vadd.f32 %v441_v24, %v321_v28  ;;  %v970_v24 = vld [vmem:[%s1475_s7 + $0x20] sm:$0xff]  ;;  %v972_v28 = vld [vmem:[%s1475_s7 + $0x30] sm:$0xff] }
 0x210   :  { %v1483_v49 = vmax.f32 %v1320_v40, 0.0 }
 0x215   :  { %v443_v27 = vpop.f32.mrf.mxu1 }
 0x216   :  { %v1316_v38 = vadd.f32 %v443_v27, %v326_v26  ;;  %v971_v26 = vld [vmem:[%s1475_s7 + $0x28] sm:$0xff]  ;;  %v968_v27 = vld [vmem:[%s1475_s7 + $0x10] sm:$0xff] }
 0x218   :  { %v1482_v45 = vmax.f32 %v1316_v38, 0.0 }
 0x21a   :  { %v489_v53 = vpack.c.bf16 %v1482_v45, %v1483_v49 }
 0x21d   :  { %v446_v31 = vpop.f32.mrf.mxu1 }
 0x21e   :  { %v1314_v35 = vadd.f32 %v446_v31, %v331_v23  ;;  %v966_v23 = vld [vmem:[%s1475_s7] sm:$0xff]  ;;  %v510_v31 = vpop.permute.xlu2 %509 }
 0x220   :  { %v1481_v41 = vmax.f32 %v1314_v35, 0.0 }
 0x225   :  { %v448_v37 = vpop.f32.mrf.mxu1 }
 0x226   :  { %v1318_v39 = vadd.f32 %v448_v37, %v336_v25  ;;  %v967_v25 = vld [vmem:[%s1475_s7 + $0x8] sm:$0xff]  ;;  %v525_v34 = vpop.permute.xlu2 %524  ;;  %v535_v37 = vpop.permute.xlu1 %534  ;;  %s1027_s7 = smov [#allocation3]  }
 0x227   :  { %s863_s24 = sshll.u32 %s1027_s7, 4  ;;  %s864_s24 = int_to_ptr.vmem [resolvable:$true] %s863_s24 }
 0x228   :  { %v1480_v42 = vmax.f32 %v1318_v39, 0.0 }
 0x22a   :  { %v490_v46 = vpack.c.bf16 %v1480_v42, %v1481_v41 }
 0x22c   :  { %635 = vmatpush.bf16.msra.mxu2 %v490_v46  ;;  %976 = vmatpush.bf16.msra.mxu3 %v490_v46  ;;  %v1418_v46 = vpop.permute.xlu0 %544 }
 0x22e   :  { %v540_v43 = vpop.permute.xlu2 %539 }
 0x230   :  { %636 = vmatpush.bf16.msra.mxu2 %v489_v53  ;;  %977 = vmatpush.bf16.msra.mxu3 %v489_v53  ;;  %v550_v53 = vpop.permute.xlu1 %549 }
 0x234   :  { %637 = vmatpush.bf16.msra.mxu2 %v488_v59  ;;  %978 = vmatpush.bf16.msra.mxu3 %v488_v59  ;;  %v560_v59 = vpop.permute.xlu0 %559 }
 0x236   :  { %v555_v54 = vpop.permute.xlu2 %554 }
 0x238   :  { %638 = vmatpush.bf16.msra.mxu2 %v487_v2  ;;  %979 = vmatpush.bf16.msra.mxu3 %v487_v2  ;;  %v565_v2 = vpop.permute.xlu1 %564 }
 0x23c   :  { %639 = vmatpush.bf16.msra.mxu2 %v486_v9  ;;  %980 = vmatpush.bf16.msra.mxu3 %v486_v9  ;;  %v1422_v12 = vpop.permute.xlu0 %574 }
 0x23e   :  { %v1420_v3 = vpop.permute.xlu2 %569 }
 0x240   :  { %640 = vmatpush.bf16.msra.mxu2 %v485_v15  ;;  %981 = vmatpush.bf16.msra.mxu3 %v485_v15  ;;  %v1424_v15 = vpop.permute.xlu1 %579 }
 0x244   :  { %641 = vmatpush.bf16.msra.mxu2 %v484_v20  ;;  %982 = vmatpush.bf16.msra.mxu3 %v484_v20 }
 0x248   :  { %642 = vmatpush.bf16.msra.mxu2 %v483_v22  ;;  %983 = vmatpush.bf16.msra.mxu3 %v483_v22  ;;  %v1426_v22 = vpop.permute.xlu2 %584 }
 0x24b   :  { %643 = vmatmul.bf16.vlgmr.msra.gmra.mxu2 %v966_v23  ;;  %663 = vmatmul.bf16.vlgmr.msra.gmra.mxu3 %v970_v24  ;;  %v735_v23 = vpop.permute.xlu0 %734 }
 0x25b   :  { %648 = vmatmul.bf16.gmra.mxu2 %v967_v25  ;;  %668 = vmatmul.bf16.gmra.mxu3 %v971_v26  ;;  %v740_v25 = vpop.permute.xlu1 %739 }
 0x263   :  { %v755_v1 = vpop.permute.xlu1 %754 }
 0x26b   :  { %653 = vmatmul.bf16.gmra.mxu2 %v968_v27  ;;  %673 = vmatmul.bf16.gmra.mxu3 %v972_v28  ;;  %v745_v27 = vpop.permute.xlu2 %744  ;;  %v770_v11 = vpop.permute.xlu1 %769 }
 0x273   :  { %v760_v14 = vpop.permute.xlu2 %759 }
 0x27b   :  { %658 = vmatmul.bf16.gmra.mxu2 %v969_v29  ;;  %678 = vmatmul.bf16.gmra.mxu3 %v973_v30  ;;  %v750_v29 = vpop.permute.xlu0 %749 }
 0x2ce   :  { %v644_v47 = vpop.f32.mrf.mxu2  ;;  %v664_v50 = vpop.f32.mrf.mxu3 }
 0x2cf   :  { %v645_v30 = vadd.f32 %v644_v47, %v510_v31  ;;  %v765_v47 = vpop.permute.xlu0 %764  ;;  %v665_v17 = vadd.f32 %v664_v50, %v550_v53 }
 0x2d1   :  { %v684_v52 = vmax.f32 %v645_v30, 0.0 }
 0x2d6   :  { %v646_v60 = vpop.f32.mrf.mxu2  ;;  %v666_v63 = vpop.f32.mrf.mxu3 }
 0x2d7   :  { %v647_v28 = vadd.f32 %v646_v60, %v515_v32  ;;  %v700_v32 = vadd.f32 %v684_v52, %v451_v21  ;;  %v780_v53 = vpop.permute.xlu0 %779 }
 0x2d9   :  { %v685_v45 = vmax.f32 %v647_v28, 0.0  ;;  %v812_v13 = vmul.f32 %v735_v23, %v700_v32  ;;  %v692_v23 = vmax.f32 %v665_v17, 0.0 }
 0x2db   :  { %v701_v5 = vadd.f32 %v685_v45, %v452_v19 }
 0x2dd   :  { %v813_v60 = vmul.f32 %v740_v25, %v701_v5 }
 0x2de   :  { %v649_v6 = vpop.f32.mrf.mxu2  ;;  %v669_v9 = vpop.f32.mrf.mxu3 }
 0x2df   :  { %v650_v42 = vadd.f32 %v649_v6, %v520_v33  ;;  %v828_v52 = vadd.f32 %v813_v60, %v812_v13 }
 0x2e1   :  { %v686_v56 = vmax.f32 %v650_v42, 0.0  ;;  %v1493_v42 = vmax.f32 %v1365_v8, 0.0 }
 0x2e3   :  { %v702_v31 = vadd.f32 %v686_v56, %v453_v18  ;;  %v1495_v56 = vmax.f32 %v1354_v0, 0.0  ;;  %v667_v18 = vadd.f32 %v666_v63, %v555_v54  ;;  %v1497_v63 = vmax.f32 %v1341_v55, 0.0 }
 0x2e4   :  { %v1500_v55 = vmax.f32 %v1331_v48, 0.0 }
 0x2e5   :  { %v814_v45 = vmul.f32 %v745_v27, %v702_v31  ;;  %v693_v28 = vmax.f32 %v667_v18, 0.0 }
 0x2e6   :  { %v651_v16 = vpop.f32.mrf.mxu2  ;;  %v671_v20 = vpop.f32.mrf.mxu3 }
 0x2e7   :  { %v652_v49 = vadd.f32 %v651_v16, %v525_v34  ;;  %v672_v0 = vadd.f32 %v671_v20, %v565_v2 }
 0x2e9   :  { %v687_v7 = vmax.f32 %v652_v49, 0.0 }
 0x2ee   :  { %v654_v24 = vpop.f32.mrf.mxu2  ;;  %v674_v26 = vpop.f32.mrf.mxu3 }
 0x2ef   :  { %v655_v58 = vadd.f32 %v654_v24, %v530_v36  ;;  %v703_v36 = vadd.f32 %v687_v7, %v1493_v42  ;;  %v1496_v7 = vmax.f32 %v1351_v61, 0.0  ;;  %v675_v61 = vadd.f32 %v674_v26, %v1420_v3 }
 0x2f1   :  { %v688_v33 = vmax.f32 %v655_v58, 0.0  ;;  %v815_v21 = vmul.f32 %v750_v29, %v703_v36 }
 0x2f6   :  { %v656_v41 = vpop.f32.mrf.mxu2  ;;  %v676_v62 = vpop.f32.mrf.mxu3 }
 0x2f7   :  { %v657_v10 = vadd.f32 %v656_v41, %v535_v37  ;;  %v1494_v41 = vmax.f32 %v1361_v4, 0.0  ;;  %v829_v37 = vadd.f32 %v828_v52, %v814_v45  ;;  %v670_v4 = vadd.f32 %v669_v9, %v560_v59 }
 0x2f9   :  { %v689_v6 = vmax.f32 %v657_v10, 0.0  ;;  %v704_v49 = vadd.f32 %v688_v33, %v1494_v41  ;;  %v830_v25 = vadd.f32 %v829_v37, %v815_v21  ;;  %v694_v32 = vmax.f32 %v670_v4, 0.0 }
 0x2fa   :  { %v1498_v33 = vmax.f32 %v1344_v57, 0.0 }
 0x2fb   :  { %v705_v58 = vadd.f32 %v689_v6, %v1495_v56  ;;  %v816_v8 = vmul.f32 %v755_v1, %v704_v49  ;;  %v708_v1 = vadd.f32 %v692_v23, %v1497_v63  ;;  %v710_v36 = vadd.f32 %v694_v32, %v1500_v55 }
 0x2fc   :  { %v696_v6 = vmax.f32 %v675_v61, 0.0 }
 0x2fd   :  { %v817_v27 = vmul.f32 %v760_v14, %v705_v58  ;;  %v831_v29 = vadd.f32 %v830_v25, %v816_v8  ;;  %v1499_v14 = vmax.f32 %v1334_v51, 0.0  ;;  %v1501_v51 = vmax.f32 %v1324_v44, 0.0 }
 0x2fe   :  { %v659_v34 = vpop.f32.mrf.mxu2  ;;  %v679_v5 = vpop.f32.mrf.mxu3  ;;  %v1504_v44 = vmax.f32 %v1314_v35, 0.0 }
 0x2ff   :  { %v660_v16 = vadd.f32 %v659_v34, %v540_v43  ;;  %v775_v43 = vpop.permute.xlu2 %774  ;;  %v832_v31 = vadd.f32 %v831_v29, %v817_v27  ;;  %v709_v9 = vadd.f32 %v693_v28, %v1499_v14  ;;  %v677_v34 = vadd.f32 %v676_v62, %v1422_v12  ;;  %v795_v12 = vpop.permute.xlu0 %794 }
 0x300   :  { %v820_v60 = vmul.f32 %v775_v43, %v708_v1  ;;  %v680_v3 = vadd.f32 %v679_v5, %v1424_v15  ;;  %v1503_v15 = vmax.f32 %v1316_v38, 0.0 }
 0x301   :  { %v690_v19 = vmax.f32 %v660_v16, 0.0  ;;  %v821_v16 = vmul.f32 %v780_v53, %v709_v9  ;;  %v697_v45 = vmax.f32 %v677_v34, 0.0 }
 0x302   :  { %v698_v48 = vmax.f32 %v680_v3, 0.0 }
 0x303   :  { %v706_v10 = vadd.f32 %v690_v19, %v1496_v7  ;;  %v1502_v19 = vmax.f32 %v1320_v40, 0.0  ;;  %v713_v56 = vadd.f32 %v697_v45, %v1503_v15  ;;  %v1505_v7 = vmax.f32 %v1318_v39, 0.0 }
 0x304   :  { %v714_v5 = vadd.f32 %v698_v48, %v1504_v44 }
 0x305   :  { %v818_v30 = vmul.f32 %v765_v47, %v706_v10  ;;  %v785_v47 = vpop.permute.xlu1 %784  ;;  %v712_v17 = vadd.f32 %v696_v6, %v1502_v19 }
 0x306   :  { %v661_v24 = vpop.f32.mrf.mxu2  ;;  %v681_v42 = vpop.f32.mrf.mxu3  ;;  %v822_v49 = vmul.f32 %v785_v47, %v710_v36 }
 0x307   :  { %v662_v50 = vadd.f32 %v661_v24, %v1418_v46  ;;  %v695_v46 = vmax.f32 %v672_v0, 0.0  ;;  %v833_v2 = vadd.f32 %v832_v31, %v818_v30  ;;  %v790_v57 = vpop.permute.xlu2 %789  ;;  %v682_v62 = vadd.f32 %v681_v42, %v1426_v22  ;;  %v810_v4 = vpop.permute.xlu0 %809 }
 0x308   :  { %v824_v18 = vmul.f32 %v795_v12, %v712_v17 }
 0x309   :  { %v691_v54 = vmax.f32 %v662_v50, 0.0  ;;  %v711_v13 = vadd.f32 %v695_v46, %v1501_v51 }
 0x30b   :  { %v707_v59 = vadd.f32 %v691_v54, %v1498_v33  ;;  %v823_v21 = vmul.f32 %v790_v57, %v711_v13 }
 0x30d   :  { %v819_v20 = vmul.f32 %v770_v11, %v707_v59  ;;  %v699_v11 = vmax.f32 %v682_v62, 0.0  ;;  %v800_v8 = vpop.permute.xlu1 %799 }
 0x30e   :  { %v825_v22 = vmul.f32 %v800_v8, %v713_v56 }
 0x30f   :  { %v834_v26 = vadd.f32 %v833_v2, %v819_v20  ;;  %v715_v10 = vadd.f32 %v699_v11, %v1505_v7  ;;  %v805_v43 = vpop.permute.xlu2 %804 }
 0x310   :  { %v826_v23 = vmul.f32 %v805_v43, %v714_v5 }
 0x311   :  { %v835_v41 = vadd.f32 %v834_v26, %v820_v60  ;;  %v827_v25 = vmul.f32 %v810_v4, %v715_v10 }
 0x313   :  { %v836_v52 = vadd.f32 %v835_v41, %v821_v16 }
 0x315   :  { %v837_v58 = vadd.f32 %v836_v52, %v822_v49  ;;  %v853_v35 = vpop.permute.xlu1 %852 }
 0x316   :  { %v855_v39 = vperm.slane %v853_v35, 0 }
 0x317   :  { %v838_v37 = vadd.f32 %v837_v58, %v823_v21 }
 0x319   :  { %v839_v40 = vadd.f32 %v838_v37, %v824_v18 }
 0x31b   :  { %v840_v24 = vadd.f32 %v839_v40, %v825_v22 }
 0x31d   :  { %v841_v38 = vadd.f32 %v840_v24, %v826_v23 }
 0x31f   :  { %v842_v27 = vadd.f32 %v841_v38, %v827_v25 }
 0x321   :  { %v843_v50 = vrot.slane %v842_v27, 4 }
 0x323   :  { %v844_v53 = vadd.f32 %v843_v50, %v842_v27 }
 0x325   :  { %v845_v28 = vrot.slane %v844_v53, 2 }
 0x327   :  { %v846_v0 = vadd.f32 %v845_v28, %v844_v53 }
 0x329   :  { %v847_v29 = vrot.slane %v846_v0, 1 }
 0x32b   :  { %v848_v30 = vadd.f32 %v847_v29, %v846_v0 }
 0x32d   :  { %v856_v54 = vadd.f32 %v855_v39, %v848_v30 }
 0x32f   :  { %857 = vst [vmem:[#allocation3] sm:$0x1] %v856_v54 }
 0x330   :  { %868 = dma.vmem_to_hbm [thread:$0]  %s864_s24, 16, %s866_s27, [#allocation4]  }
 0x331   :  { %1022 = dma.done.wait [#allocation4], 16  }
 0x332   :  { %1023 = vsyncadd [#allocation4], 4294967280 }
 0x333   :  { %873 = vsyncpa [#allocation4], 1 }

</bundles_post_ra>
